<compile_context>
chip_gen: v7x
topology: tpu7x:2x2x1
jax: 0.10.0
libtpu: 0.0.40
codegen_flags: <defaults>
</compile_context>

<pallas_src>
import jax
import jax.numpy as jnp
from jax import lax
from jax.experimental import pallas as pl
from jax.experimental.pallas import tpu as pltpu


def _round_up(x, m):
    return ((x + m - 1) // m) * m


def _sublane_multiple(itemsize):
    # f32 -> 8 sublanes per vreg tile, bf16 -> 16, int8/fp8 -> 32.
    return 8 * max(1, 4 // int(itemsize))


def _tpu_target():
    """Return (vmem_capacity_bytes, num_tensorcores) with conservative fallbacks."""
    vmem = 64 * 1024 * 1024  # most conservative (v7x has the smallest VMEM)
    num_tc = 2
    try:
        info = pltpu.get_tpu_info()
        vmem = int(info.vmem_capacity_bytes)
        num_tc = None
        for attr in ("num_tensorcores", "tensorcore_count", "num_cores", "core_count"):
            v = getattr(info, attr, None)
            if isinstance(v, int) and v > 0:
                num_tc = v
                break
        if num_tc is None:
            # 64 MiB-per-core parts (v7x) have 2 TCs/chip; 128 MiB parts (v5e/v6e) have 1.
            num_tc = 2 if vmem <= 64 * 1024 * 1024 else 1
    except Exception:
        pass
    return vmem, num_tc


def _make_prompt_concat_kernel(n_ctx, suf_len, csc, c_blk):
    """Build the kernel body (all sizes are static / closed over)."""

    def kernel(prefix_ref, ctx_ref, suffix_ref, out_ref):
        # prefix_ref : (c_blk, 1, D)
        # ctx_ref    : (n_ctx, D)        shared context, or
        #              (c_blk, n_ctx, D) class-specific context (CSC)
        # suffix_ref : (c_blk, suf_len, D)
        # out_ref    : (c_blk, L, D), L = 1 + n_ctx + suf_len
        #
        # Three direct sub-slice stores -- no concatenate, no full-tile temp.
        out_ref[:, 0:1, :] = prefix_ref[...]

        if csc:
            out_ref[:, 1:1 + n_ctx, :] = ctx_ref[...].astype(out_ref.dtype)
        else:
            # Cast once; store the same vregs per class instead of
            # materializing a (c_blk, n_ctx, D) broadcast every grid step.
            ctx = ctx_ref[...].astype(out_ref.dtype)
            if c_blk <= 32:
                for c in range(c_blk):  # static unroll, all-static indices
                    out_ref[c, 1:1 + n_ctx, :] = ctx
            else:
                def body(c, carry):
                    out_ref[c, 1:1 + n_ctx, :] = ctx
                    return carry
                lax.fori_loop(0, c_blk, body, 0)

        out_ref[:, 1 + n_ctx:1 + n_ctx + suf_len, :] = suffix_ref[...]

    return kernel


def prompt_learner_forward(ctx, token_prefix, token_suffix):
    """Pallas implementation of PromptLearner.forward() for position == 'end'.

    ctx          : (n_ctx, D) generic context  OR  (n_cls, n_ctx, D) class-specific
    token_prefix : (n_cls, 1, D)
    token_suffix : (n_cls, suf_len, D)
    returns      : (n_cls, 1 + n_ctx + suf_len, D), dtype of token_prefix
    """
    n_cls, _, D = token_prefix.shape
    suf_len = token_suffix.shape[1]
    n_ctx = ctx.shape[-2]
    L = 1 + n_ctx + suf_len
    out_dtype = token_prefix.dtype
    osz = jnp.dtype(out_dtype).itemsize
    csz = jnp.dtype(ctx.dtype).itemsize
    csc = ctx.ndim == 3

    sub_out = _sublane_multiple(osz)
    sub_ctx = _sublane_multiple(csz)

    # ---- per-generation VMEM / core-count aware sizing ----------------------
    vmem_cap, num_tc = _tpu_target()
    vmem_limit = int(min(vmem_cap * 3 // 4, 100 * 1024 * 1024))  # ~96 MiB on 128 MiB parts, 48 MiB on v7x
    pipe_budget = vmem_limit * 3 // 4                             # headroom for non-pipelined use
    # On 2-TC parts keep output tiles modest (~4 MiB) so >=4 balanced steps fit;
    # on 1-TC parts let one large step use the whole budget.
    out_tile_cap = 4 * 1024 * 1024 if num_tc > 1 else pipe_budget

    # Double-buffered VMEM bytes per class per step, including sublane padding
    # and each operand's OWN itemsize (ctx may be f32 while embeddings are bf16).
    row_bytes_out = D * osz
    per_class = (
        _round_up(1, sub_out) * row_bytes_out          # prefix tile pads (1,D)->(sub,D)
        + _round_up(suf_len, sub_out) * row_bytes_out  # suffix
        + _round_up(L, sub_out) * row_bytes_out        # output
    )
    if csc:
        per_class += _round_up(n_ctx, sub_ctx) * D * csz
        shared = 0
    else:
        shared = _round_up(n_ctx, sub_ctx) * D * csz
    per_class *= 2  # double-buffered pipeline
    shared *= 2

    c_cap = max(1, (pipe_budget - shared) // per_class)
    c_cap = min(c_cap, max(1, out_tile_cap // (_round_up(L, sub_out) * row_bytes_out)))
    c_cap = int(min(c_cap, n_cls))

    # Megacore-aware split: only force multiple steps when there are >1 TCs.
    if num_tc > 1 and n_cls >= 2:
        target_steps = min(n_cls, max(2 * num_tc, 4))
        c_cap = min(c_cap, max(1, pl.cdiv(n_cls, target_steps)))

    # Prefer a divisor of n_cls (no ragged tail / masked partial blocks);
    # fall back to c_cap if only tiny divisors exist.
    c_blk = c_cap
    for d in range(c_cap, 0, -1):
        if n_cls % d == 0:
            c_blk = d
            break
    if c_blk < max(1, c_cap // 2):
        c_blk = c_cap  # accept ragged tail; Pallas masks the OOB output rows

    grid = (pl.cdiv(n_cls, c_blk),)

    # ---- block specs ---------------------------------------------------------
    if csc:
        ctx_spec = pl.BlockSpec((c_blk, n_ctx, D), lambda i: (i, 0, 0))
    else:
        # Shared context: constant block index -> Pallas skips the redundant
        # per-step re-DMA; the extra pipeline buffer is only n_ctx*D bytes.
        ctx_spec = pl.BlockSpec((n_ctx, D), lambda i: (0, 0))

    kernel = _make_prompt_concat_kernel(n_ctx, suf_len, csc, c_blk)

    return pl.pallas_call(
        kernel,
        out_shape=jax.ShapeDtypeStruct((n_cls, L, D), out_dtype),
        grid_spec=pltpu.PrefetchScalarGridSpec(
            num_scalar_prefetch=0,
            grid=grid,
            in_specs=[
                pl.BlockSpec((c_blk, 1, D), lambda i: (i, 0, 0)),        # token_prefix
                ctx_spec,                                                # ctx
                pl.BlockSpec((c_blk, suf_len, D), lambda i: (i, 0, 0)),  # token_suffix
            ],
            out_specs=pl.BlockSpec((c_blk, L, D), lambda i: (i, 0, 0)),
        ),
        compiler_params=pltpu.CompilerParams(
            dimension_semantics=("parallel",),
            vmem_limit_bytes=vmem_limit,
        ),
    )(token_prefix, ctx, token_suffix)


def _reference_forward(ctx, token_prefix, token_suffix):
    n_cls = token_prefix.shape[0]
    if ctx.ndim == 2:
        ctx = jnp.broadcast_to(ctx[None], (n_cls,) + ctx.shape)
    return jnp.concatenate(
        [token_prefix, ctx.astype(token_prefix.dtype), token_suffix], axis=1)


if __name__ == "__main__":
    # Small, deterministic synthetic setup (stands in for the tokenizer + BERT
    # word-embedding lookups; no checkpoint loading).
    n_cls = 4        # number of class names
    n_ctx = 4        # learned context tokens
    ctx_dim = 128    # embedding dim (768 in the real model; 128 keeps it small/lane-aligned)
    suf_len = 11     # suffix tokens: class name + '.' + padding
    dtype = jnp.float32

    key = jax.random.PRNGKey(0)
    k_ctx, k_pre, k_suf, k_csc, k_pre2, k_suf2 = jax.random.split(key, 6)

    # nn.init.normal_(ctx_vectors, std=0.02)
    ctx_generic = 0.02 * jax.random.normal(k_ctx, (n_ctx, ctx_dim), dtype=dtype)
    ctx_csc = 0.02 * jax.random.normal(k_csc, (n_cls, n_ctx, ctx_dim), dtype=dtype)
    # frozen word-embedding slices (token_prefix / token_suffix buffers)
    token_prefix = jax.random.normal(k_pre, (n_cls, 1, ctx_dim), dtype=dtype)
    token_suffix = jax.random.normal(k_suf, (n_cls, suf_len, ctx_dim), dtype=dtype)

    # generic (shared) context, like cfg['CSC'] = False
    out = prompt_learner_forward(ctx_generic, token_prefix, token_suffix)
    out = jax.block_until_ready(out)
    ref = _reference_forward(ctx_generic, token_prefix, token_suffix)
    assert out.shape == (n_cls, 1 + n_ctx + suf_len, ctx_dim)
    assert jnp.allclose(out, ref), "generic-context mismatch"

    # class-specific context, like cfg['CSC'] = True
    out_csc = prompt_learner_forward(ctx_csc, token_prefix, token_suffix)
    out_csc = jax.block_until_ready(out_csc)
    ref_csc = _reference_forward(ctx_csc, token_prefix, token_suffix)
    assert jnp.allclose(out_csc, ref_csc), "class-specific-context mismatch"

    # mixed-dtype path: bf16 embeddings with f32 learned ctx (cast happens in-kernel)
    pre_bf16 = token_prefix.astype(jnp.bfloat16)
    suf_bf16 = token_suffix.astype(jnp.bfloat16)
    out_bf16 = prompt_learner_forward(ctx_generic, pre_bf16, suf_bf16)
    out_bf16 = jax.block_until_ready(out_bf16)
    ref_bf16 = _reference_forward(ctx_generic, pre_bf16, suf_bf16)
    assert out_bf16.dtype == jnp.bfloat16
    assert jnp.allclose(out_bf16.astype(jnp.float32),
                        ref_bf16.astype(jnp.float32)), "bf16-cast mismatch"

    # a non-power-of-two class count to exercise the divisor / multi-step grid path
    n_cls2 = 10
    pre2 = jax.random.normal(k_pre2, (n_cls2, 1, ctx_dim), dtype=dtype)
    suf2 = jax.random.normal(k_suf2, (n_cls2, suf_len, ctx_dim), dtype=dtype)
    out2 = prompt_learner_forward(ctx_generic, pre2, suf2)
    out2 = jax.block_until_ready(out2)
    ref2 = _reference_forward(ctx_generic, pre2, suf2)
    assert jnp.allclose(out2, ref2), "10-class generic-context mismatch"

    print("KERNEL_OK")
</pallas_src>

<mosaic_0001>
module attributes {stable_mosaic.version = 11 : i64} {
  func.func @kernel(%arg0: i32, %arg1: memref<1x1x128xf32, #tpu.memory_space<vmem>>, %arg2: memref<4x128xf32, #tpu.memory_space<vmem>>, %arg3: memref<1x11x128xf32, #tpu.memory_space<vmem>>, %arg4: memref<1x16x128xf32, #tpu.memory_space<vmem>>) attributes {dimension_semantics = [#tpu.dimension_semantics<parallel>], iteration_bounds = array<i64: 4>, scalar_prefetch = 0 : i64, scratch_operands = 0 : i64, tpu.core_type = #tpu.core_type<tc>, window_params = [{transform_indices = @transform_0, window_bounds = array<i64: 1, 1, 128>}, {pipeline_mode = #tpu.pipeline_mode<synchronous>, transform_indices = @transform_1, window_bounds = array<i64: 4, 128>}, {transform_indices = @transform_2, window_bounds = array<i64: 1, 11, 128>}, {transform_indices = @transform_3, window_bounds = array<i64: 1, 16, 128>}]} {
    %c0 = arith.constant 0 : index
    %c0_0 = arith.constant 0 : index
    %c0_1 = arith.constant 0 : index
    %0 = vector.load %arg1[%c0, %c0_0, %c0_1] : memref<1x1x128xf32, #tpu.memory_space<vmem>>, vector<1x1x128xf32>
    %c0_2 = arith.constant 0 : index
    %c0_3 = arith.constant 0 : index
    %c0_4 = arith.constant 0 : index
    %1 = vector.load %arg4[%c0_2, %c0_3, %c0_4] : memref<1x16x128xf32, #tpu.memory_space<vmem>>, vector<1x1x128xf32>
    tpu.vector_store %arg4[%c0_2, %c0_3, %c0_4], %0 {strides = array<i32>} : memref<1x16x128xf32, #tpu.memory_space<vmem>>, vector<1x1x128xf32>,
    %c0_5 = arith.constant 0 : index
    %c0_6 = arith.constant 0 : index
    %2 = vector.load %arg2[%c0_5, %c0_6] : memref<4x128xf32, #tpu.memory_space<vmem>>, vector<4x128xf32>
    %c0_7 = arith.constant 0 : index
    %c1 = arith.constant 1 : index
    %c0_8 = arith.constant 0 : index
    %3 = vector.load %arg4[%c0_7, %c1, %c0_8] : memref<1x16x128xf32, #tpu.memory_space<vmem>>, vector<1x4x128xf32>
    %4 = vector.shape_cast %3 : vector<1x4x128xf32> to vector<4x128xf32>
    %5 = vector.shape_cast %2 : vector<4x128xf32> to vector<1x4x128xf32>
    tpu.vector_store %arg4[%c0_7, %c1, %c0_8], %5 {strides = array<i32>} : memref<1x16x128xf32, #tpu.memory_space<vmem>>, vector<1x4x128xf32>,
    %c0_9 = arith.constant 0 : index
    %c0_10 = arith.constant 0 : index
    %c0_11 = arith.constant 0 : index
    %6 = vector.load %arg3[%c0_9, %c0_10, %c0_11] : memref<1x11x128xf32, #tpu.memory_space<vmem>>, vector<1x11x128xf32>
    %c0_12 = arith.constant 0 : index
    %c5 = arith.constant 5 : index
    %c0_13 = arith.constant 0 : index
    %7 = vector.load %arg4[%c0_12, %c5, %c0_13] : memref<1x16x128xf32, #tpu.memory_space<vmem>>, vector<1x11x128xf32>
    tpu.vector_store %arg4[%c0_12, %c5, %c0_13], %6 {strides = array<i32>} : memref<1x16x128xf32, #tpu.memory_space<vmem>>, vector<1x11x128xf32>,
    return
  }
  func.func @transform_0(%arg0: i32) -> (i32, i32, i32) {
    %c0_i32 = arith.constant 0 : i32
    %c0_i32_0 = arith.constant 0 : i32
    %c0_i32_1 = arith.constant 0 : i32
    return %arg0, %c0_i32, %c0_i32_0 : i32, i32, i32
  }
  func.func @transform_1(%arg0: i32) -> (i32, i32) {
    %c0_i32 = arith.constant 0 : i32
    %c0_i32_0 = arith.constant 0 : i32
    %c0_i32_1 = arith.constant 0 : i32
    return %c0_i32, %c0_i32_0 : i32, i32
  }
  func.func @transform_2(%arg0: i32) -> (i32, i32, i32) {
    %c0_i32 = arith.constant 0 : i32
    %c0_i32_0 = arith.constant 0 : i32
    %c0_i32_1 = arith.constant 0 : i32
    return %arg0, %c0_i32, %c0_i32_0 : i32, i32, i32
  }
  func.func @transform_3(%arg0: i32) -> (i32, i32, i32) {
    %c0_i32 = arith.constant 0 : i32
    %c0_i32_0 = arith.constant 0 : i32
    %c0_i32_1 = arith.constant 0 : i32
    return %arg0, %c0_i32, %c0_i32_0 : i32, i32, i32
  }
}

</mosaic_0001>

<bundles_post_ra>
// kernel: tpu_custom_call.1
= control target key start
LH: loop header
LB: loop body
LE: loop exit
PB: predicated region body
PF: predicated region fallthrough
CT: control target
= control target key end

     0   :  { %8 = vsyncpa [#allocation3], 0  ;;  %s521_s0 = inlined_call_operand.vmem [shape: f32[4,1,128], index: 0, kind: input, shape index: {}]   ;;  %s522_s1 = inlined_call_operand.vmem [shape: f32[4,128], index: 1, kind: input, shape index: {}]   ;;  %s523_s2 = inlined_call_operand.vmem [shape: f32[4,11,128], index: 2, kind: input, shape index: {}]   ;;  %s524_s3 = inlined_call_operand.hbm [shape: f32[4,16,128], index: 3, kind: output, shape index: {}]  }
   0x1   :  { %10 = vsyncpa [#allocation3 + $0x1], 0  ;;  %s418_s12 = smov 0   ;;  %s420_s13 = smov 0  }
   0x2   :  { %s422_s14 = smov 0   ;;  %s424_s15 = smov 0  }
   0x3 LB: > { %s275_s16 = sadd.s32 4294967295, %s393_s15   ;;  %s276_s17 = sadd.s32 4294967294, %s393_s15   ;;  %s393_s15 = sphi %s424_s15, %s530_s15   ;;  %s389_s14 = sphi %s422_s14, %s529_s14   ;;  %s385_s13 = sphi %s420_s13, %s528_s13   ;;  %s381_s12 = sphi %s418_s12, %s527_s12  }
   0x4   : > { %s441_s18 = sadd.s32 1, %s393_s15   ;;  %s96_s19 = sadd.s32 1, %s389_s14 }
   0x5   : > { %s93_s20 = ssub.s32 %s393_s15, %s441_s18  ;;  %p106_p0 = scmp.ne.s32.totalorder %s389_s14, %s385_s13 }
   0x6   : > { %p94_p1 = scmp.eq.s32.totalorder %s93_s20, 0  ;;  %p107_p2 = scmp.eq.s32.totalorder %s275_s16, 3 }
   0x7   : > { %p112_p3 = scmp.ne.s32.totalorder %s385_s13, %s381_s12  ;;  %p113_p4 = scmp.eq.s32.totalorder %s276_s17, 3 }
   0x8   : > { %s451_s21 = scalar_select %p94_p1, %s389_s14, %s96_s19  }
   0x9   : > { %p453_p5 = por %p107_p2, %p106_p0  ;;  %p457_p6 = por %p113_p4, %p112_p3 }
   0xa   : > { %p279_p7 = scmp.ge.s32.totalorder %s393_s15, 1  ;;  %p148_p8 = scmp.lt.s32.totalorder %s393_s15, 5 }
   0xc   : > { %p149_p9 = pnand %p279_p7, %p148_p8 }
   0xd   : > { %s172_s24 = sand.u32 (!%p149_p9), 1, %s385_s13   ;;  %p175_p10 = scmp.lt.s32.totalorder (!%p149_p9), %s275_s16, 3  ;;  %v185_v0 = vld [vmem:[%s522_s1] sm:$0xf] (!%p149_p9) }
   0xe   : > { %152 = sbr.rel (%p149_p9) target bundleno = 45 (0x2d), region = 32  ;;  %s280_s27 = sshll.u32 (!%p149_p9), %s172_s24, 4 }
   0xf   : > { %s289_s28 = sshll.u32 (!%p149_p9), %s275_s16, 8  ;;  %s174_s29 = scalar_lea.vmem (!%p149_p9), [#allocation2], %s280_s27 }
  0x10   : > { %186 = vst [vmem:[%s174_s29 + $0x1] sm:$0xf] (!%p149_p9), %v185_v0  ;;  %s205_s30 = sshll.u32 (!%p149_p9), %s174_s29, 4  ;;  %s470_s6 = scalar_lea.hbm (!%p149_p9), %s524_s3, %s289_s28  ;;  %s475_s30 = int_to_ptr.vmem [resolvable:$true] %s205_s30 }
  0x11   : > { %s480_s20 = scalar_lea.sflag (!%p149_p9), [#allocation3], %s172_s24  ;;  %s331_s25 = scalar_lea.vmem (!%p149_p9), %s475_s30, 256 }
  0x12   : > { %p332_p11 = scmp.ne.s32.totalorder (!%p149_p9), %s475_s30, %s331_s25  ;;  %s395_s26 = smov (!%p149_p9), [#allocation2]  }
  0x13   : > { %s335_s27 = sshll.u32 (!%p149_p9), %s395_s26, 4  ;;  %s336_s27 = int_to_ptr.vmem [resolvable:$false] %s335_s27 }
  0x14   : > { %p333_p12 = pnand (!%p149_p9), %p332_p11, %p453_p5  ;;  %p338_p0 = scmp.lt.s32.totalorder (!%p149_p9), %s475_s30, %s336_s27 }
  0x15   : > { %s532_s16 = smov (!%p175_p10, %s275_s16), 3 }
  0x16   : > { %s177_s9 = scalar_lea.vmem %s521_s0, %s532_s16  ;;  %s288_s10 = sshll.u32 %s532_s16, 4 }
  0x17   : > { %v183_v1 = vld [vmem:[%s177_s9] sm:$0x1]  ;;  %s182_s19 = scalar_lea.vmem %s523_s2, %s288_s10  ;;  %p334_p13 = pneg %p333_p12 }
  0x18   : > { %184 = vst [vmem:[%s174_s29] sm:$0x1] %v183_v1  ;;  %v187_v2 = vld [vmem:[%s182_s19] sm:$0xff]  ;;  %v188_v3 = vld [vmem:[%s182_s19 + $0x8] sm:$0x7]  ;;  %s337_s16 = scalar_lea.vmem %s336_s27, 512 }
  0x19   : > { %189 = vst [vmem:[%s174_s29 + $0x5] sm:$0xff] %v187_v2  ;;  %190 = vst [vmem:[%s174_s29 + $0xd] sm:$0x7] %v188_v3  ;;  %p339_p1 = scmp.lt.s32.totalorder %s337_s16, %s331_s25 }
  0x1b   : > { %p340_p2 = por %p339_p1, %p338_p0 }
  0x1d   : > { %p341_p3 = pnand %p340_p2, %p334_p13 }
  0x1f   : > { %344 = shalt.err (!%p341_p3)
}
  0x20   : > { %s345_s24 = scalar_lea.hbm %s470_s6, 256  ;;  %s349_s4 = scalar_lea.hbm %s524_s3, 1024 }
  0x21   : > { %p346_p4 = scmp.ne.s32.totalorder %s470_s6, %s345_s24  ;;  %p350_p9 = scmp.lt.u32.totalorder %s470_s6, %s524_s3 }
  0x22   : > { %p351_p10 = scmp.lt.u32.totalorder %s349_s4, %s345_s24  ;;  %p353_p12 = scmp.lt.u32.totalorder %s345_s24, %s470_s6 }
  0x23   : > { %p347_p7 = pnand %p346_p4, %p453_p5 }
  0x24   : > { %p352_p11 = por %p351_p10, %p350_p9 }
  0x25   : > { %p348_p8 = pneg %p347_p7 }
  0x26   : > { %p354_p13 = por %p353_p12, %p352_p11 }
  0x28   : > { %p355_p0 = pnand %p354_p13, %p348_p8 }
  0x2a   : > { %358 = shalt.err (!%p355_p0)
}
  0x2b   : > { %s396_s8 = smov 128   ;;  %s397_s9 = smov 8  }
  0x2c   : > { %290 = dma.vmem_to_hbm [thread:$0]  (%p453_p5), %s475_s30, 256, %s470_s6, %s480_s20, %s396_s8, %s396_s8, %s397_s9  }
  0x2d PF: > { %p296_p1 = scmp.ge.s32.totalorder %s393_s15, 2  ;;  %s220_s10 = sand.u32 1, %s381_s12  }
  0x2e   : > { %s221_s11 = scalar_lea.sflag [#allocation3], %s220_s10 }
  0x2f   : > { %p293_p2 = pnand %p296_p1, %p457_p6 }
  0x31   : > { %376 = dma.done.wait (!%p293_p2), %s221_s11, 256  }
  0x32   : > { %378 = vsyncadd (!%p293_p2), %s221_s11, 4294967040  ;;  %p13_p3 = scmp.ge.s32.totalorder %s441_s18, 6   ;;  %s527_s12 = smov %s385_s13 }
  0x33   : > { %s528_s13 = smov %s389_s14  ;;  %s529_s14 = smov %s451_s21 }
  0x34   : > { %s530_s15 = smov %s441_s18  ;;  %15 = sbr.rel (!%p13_p3) target bundleno = 3 (0x3), region = 70 }
  0x3b   :  { %226 = vsyncpa [#allocation3], 1 }
  0x3c   :  { %228 = vsyncpa [#allocation3 + $0x1], 1 }

</bundles_post_ra>
